<compile_context>
chip_gen: v7x
topology: tpu7x:2x2x1
jax: 0.10.0
libtpu: 0.0.40
codegen_flags: <defaults>
</compile_context>

<pallas_src>
import math

import numpy as np
import jax
import jax.numpy as jnp
from jax.experimental import pallas as pl
from jax.experimental.pallas import tpu as pltpu

_LANE = 128
_SUBLANE = 8
_SQRT2 = np.float32(math.sqrt(2.0))


def _round_up(x, m):
    return ((x + m - 1) // m) * m


def _next_pow2(n):
    n = max(int(n), 1)
    return 1 << (n - 1).bit_length()


def _bucket_sublane(n):
    # second-to-last dims only need multiples of 8; pow-2 bucketing keeps the
    # number of distinct jit / Mosaic compilations small across ragged batches.
    return max(_SUBLANE, _next_pow2(n))


def _bucket_lane(n):
    return max(_LANE, _round_up(_next_pow2(n), _LANE))


def _pad_batch(x, b_pad):
    b = x.shape[0]
    if b_pad == b:
        return x
    return jnp.pad(x, ((0, b_pad - b),) + ((0, 0),) * (x.ndim - 1))


# ---------------------------------------------------------------------------
# Kernel 1 (fused, grid=(G,), several images per block):
#   meta[b, p, 0] = matched target column (track ids unique per frame) or -1
#   dist[b, p, q] = sqrt(2) * |x[prev_out_ind[p]] - x[q]|   (bf16)
#                   (same value as the upstream sqrt(dx^2 + dx^2) [:,0]-twice bug)
# Ragged rows are padded with sentinels (-1 vs -2) so padded rows never match.
# ---------------------------------------------------------------------------
def _match_dist_kernel(prev_ids_ref, tgt_ids_ref, out_ind_ref, boxes_x_ref,
                       meta_ref, dist_ref):
    prev_ids = prev_ids_ref[...]                      # (IB, P_pad, 1) int32
    tgt_ids = tgt_ids_ref[...]                        # (IB, 1, T_pad) int32
    mat = prev_ids == tgt_ids                         # (IB, P_pad, T_pad) bool
    col = jax.lax.broadcasted_iota(jnp.int32, mat.shape, 2)
    # single cross-lane reduction: matched column, -1 if no match
    meta_ref[...] = jnp.max(jnp.where(mat, col, -1), axis=2, keepdims=True)

    # false-positive weight matrix for ALL rows x ALL queries (host selects
    # matched rows and surviving candidate columns later)
    x_q = boxes_x_ref[...]                            # (IB, 1, Q_pad) f32
    out_ind = out_ind_ref[...]                        # (IB, P_pad, 1) int32
    qcol = jax.lax.broadcasted_iota(
        jnp.int32, (out_ind.shape[0], out_ind.shape[1], x_q.shape[2]), 2)
    sel = (out_ind == qcol).astype(jnp.float32)       # one-hot rows (IB,P_pad,Q_pad)
    # one-hot row select on the MXU (VPU/XLU stay free)
    x_sel = jnp.einsum('bpq,boq->bpo', sel, x_q,
                       preferred_element_type=jnp.float32)   # (IB, P_pad, 1)
    dx = x_sel - x_q                                   # (IB, P_pad, Q_pad)
    dist_ref[...] = (jnp.abs(dx) * _SQRT2).astype(jnp.bfloat16)


@jax.jit
def _match_and_dist(prev_ids_pad, tgt_ids_pad, out_ind_pad, pred_boxes):
    B_pad, P_pad, _ = prev_ids_pad.shape
    T_pad = tgt_ids_pad.shape[-1]
    B, Q, _ = pred_boxes.shape
    Q_pad = _round_up(max(Q, _LANE), _LANE)
    G = min(2, B_pad)                    # 2 parallel steps -> megacore on v7x
    IB = B_pad // G
    boxes_x = jnp.pad(pred_boxes[:, :, 0].astype(jnp.float32),
                      ((0, B_pad - B), (0, Q_pad - Q)))[:, None, :]   # (B_pad,1,Q_pad)
    return pl.pallas_call(
        _match_dist_kernel,
        out_shape=(
            jax.ShapeDtypeStruct((B_pad, P_pad, 1), jnp.int32),
            jax.ShapeDtypeStruct((B_pad, P_pad, Q_pad), jnp.bfloat16),
        ),
        grid=(G,),
        in_specs=[
            pl.BlockSpec((IB, P_pad, 1), lambda i: (i, 0, 0)),
            pl.BlockSpec((IB, 1, T_pad), lambda i: (i, 0, 0)),
            pl.BlockSpec((IB, P_pad, 1), lambda i: (i, 0, 0)),
            pl.BlockSpec((IB, 1, Q_pad), lambda i: (i, 0, 0)),
        ],
        out_specs=(
            pl.BlockSpec((IB, P_pad, 1), lambda i: (i, 0, 0)),
            pl.BlockSpec((IB, P_pad, Q_pad), lambda i: (i, 0, 0)),
        ),
        compiler_params=pltpu.CompilerParams(dimension_semantics=("parallel",)),
    )(prev_ids_pad, tgt_ids_pad, out_ind_pad, boxes_x)


# ---------------------------------------------------------------------------
# Kernel 2 (grid=(G,)): row gather via one-hot MXU matmuls in native dtype
#   hs_out[k, :]  = hs_embed[idx[k], :]
#   box_out[k, :] = pred_boxes[idx[k], :]
# hs_embed / pred_boxes are fed separately (no XLA-side concat+pad copy).
# ---------------------------------------------------------------------------
def _gather_kernel(idx_ref, hs_ref, box_ref, hs_out_ref, box_out_ref):
    idx = idx_ref[...]                                # (IB, K_pad, 1) int32
    qcol = jax.lax.broadcasted_iota(
        jnp.int32, (idx.shape[0], idx.shape[1], hs_ref.shape[1]), 2)
    onehot = idx == qcol                              # (IB, K_pad, Q) bool
    oh_hs = onehot.astype(hs_ref.dtype)               # exact in bf16 or f32
    hs_out_ref[...] = jnp.einsum(
        'bkq,bqh->bkh', oh_hs, hs_ref[...],
        preferred_element_type=jnp.float32).astype(hs_out_ref.dtype)
    oh_bx = onehot.astype(box_ref.dtype)
    box_out_ref[...] = jnp.einsum(
        'bkq,bqf->bkf', oh_bx, box_ref[...],
        preferred_element_type=jnp.float32).astype(box_out_ref.dtype)


@jax.jit
def _gather_rows(idx_pad, hs_embed, pred_boxes):
    B_pad, K_pad, _ = idx_pad.shape
    B, Q, H = hs_embed.shape
    G = min(2, B_pad)
    IB = B_pad // G
    hs = _pad_batch(hs_embed, B_pad)
    bx = _pad_batch(pred_boxes, B_pad)
    return pl.pallas_call(
        _gather_kernel,
        out_shape=(
            jax.ShapeDtypeStruct((B_pad, K_pad, H), hs_embed.dtype),
            jax.ShapeDtypeStruct((B_pad, K_pad, 4), pred_boxes.dtype),
        ),
        grid=(G,),
        in_specs=[
            pl.BlockSpec((IB, K_pad, 1), lambda i: (i, 0, 0)),
            pl.BlockSpec((IB, Q, H), lambda i: (i, 0, 0)),
            pl.BlockSpec((IB, Q, 4), lambda i: (i, 0, 0)),
        ],
        out_specs=(
            pl.BlockSpec((IB, K_pad, H), lambda i: (i, 0, 0)),
            pl.BlockSpec((IB, K_pad, 4), lambda i: (i, 0, 0)),
        ),
        compiler_params=pltpu.CompilerParams(dimension_semantics=("parallel",)),
    )(idx_pad, hs, bx)


# ---------------------------------------------------------------------------
# Module re-implementation (host control flow + batched Pallas kernels)
# ---------------------------------------------------------------------------
class DETRTrackingBasePallas:
    def __init__(self, num_queries=16, hidden_dim=32,
                 track_query_false_positive_prob=0.0,
                 track_query_false_negative_prob=0.0,
                 seed=0):
        self.num_queries = num_queries
        self.hidden_dim = hidden_dim
        self._track_query_false_positive_prob = track_query_false_positive_prob
        self._track_query_false_negative_prob = track_query_false_negative_prob
        self._rs = np.random.RandomState(seed)
        self._tracking = False
        self.training = True

    def add_track_queries_to_targets(self, targets, prev_indices, prev_out,
                                     add_false_pos=True):
        pred_boxes = prev_out['pred_boxes']           # (B, Q, 4)
        hs_embed = prev_out['hs_embed']               # (B, Q, H)
        B, Q, _ = pred_boxes.shape
        H = hs_embed.shape[-1]

        min_prev_target_ind = min(len(p[1]) for p in prev_indices)
        # TODO(synk): torch.randint / randperm / multinomial have no Pallas
        # equivalent; deterministic numpy draws replace the torch RNG.
        num_prev_target_ind = min_prev_target_ind
        num_prev_target_ind_for_fps = 0
        if num_prev_target_ind:
            num_prev_target_ind_for_fps = max(
                1, int(math.ceil(self._track_query_false_positive_prob
                                 * num_prev_target_ind)))

        # ----- host prep (numpy only): per-image ragged index lists ----------
        prev_out_inds, prev_track_ids_list, track_ids_list = [], [], []
        for target, prev_ind in zip(targets, prev_indices):
            prev_out_ind = np.asarray(prev_ind[0], np.int64)
            prev_target_ind = np.asarray(prev_ind[1], np.int64)
            if self._track_query_false_negative_prob:
                subset = self._rs.permutation(
                    len(prev_target_ind))[:num_prev_target_ind]
                prev_out_ind = prev_out_ind[subset]
                prev_target_ind = prev_target_ind[subset]
            prev_out_inds.append(prev_out_ind)
            prev_track_ids_list.append(
                np.asarray(target['prev_target']['track_ids'],
                           np.int64)[prev_target_ind])
            tids = np.asarray(target['track_ids'], np.int64)
            # argmax-by-max in kernel 1 assumes unique, non-negative, int32 ids
            assert len(np.unique(tids)) == len(tids), "track_ids must be unique"
            track_ids_list.append(tids)

        # bucketed pad sizes -> tiny fixed set of compiled shapes (no per-batch
        # Mosaic recompiles); G*ceil(B/G) images so the grid divides evenly.
        G = 2 if B >= 2 else 1
        IB = (B + G - 1) // G
        B_pad = G * IB
        P_max = max((len(p) for p in prev_track_ids_list), default=0)
        T_max = max((len(t) for t in track_ids_list), default=0)
        P_pad = _bucket_sublane(P_max)                # sublane dim: mult of 8
        T_pad = _bucket_lane(T_max)                   # lane dim: mult of 128

        prev_ids_pad = np.full((B_pad, P_pad, 1), -1, np.int32)   # never matches
        tgt_ids_pad = np.full((B_pad, 1, T_pad), -2, np.int32)    # never matches pad
        out_ind_pad = np.zeros((B_pad, P_pad, 1), np.int32)
        for i in range(B):
            p_i = len(prev_track_ids_list[i])
            t_i = len(track_ids_list[i])
            prev_ids_pad[i, :p_i, 0] = prev_track_ids_list[i]
            tgt_ids_pad[i, 0, :t_i] = track_ids_list[i]
            out_ind_pad[i, :p_i, 0] = prev_out_inds[i]

        # ---- ONE batched Pallas call + ONE host sync for the whole batch ----
        meta, dist = _match_and_dist(
            jnp.asarray(prev_ids_pad), jnp.asarray(tgt_ids_pad),
            jnp.asarray(out_ind_pad), pred_boxes)
        meta_h, dist_h = jax.device_get((meta, dist))
        # TODO(synk): the device_get -> host-RNG -> gather-launch sequence could
        # be fused on-device (pltpu.prng_* + Gumbel-max) if bit-exact numpy RNG
        # reproduction is not required.

        # ----- host control flow (FP sampling) — numpy only, no device calls -
        final_out_inds, k_list = [], []
        for i, target in enumerate(targets):
            p_i = len(prev_track_ids_list[i])
            idx_row = meta_h[i, :p_i, 0].astype(np.int64)
            matching = idx_row >= 0
            target['track_query_match_ids'] = jnp.asarray(
                idx_row[matching], jnp.int32)

            random_false_out_ind = []
            if add_false_pos:
                matched_rows = np.nonzero(matching)[0]
                not_prev_out_ind = [ind for ind in range(Q)
                                    if ind not in prev_out_inds[i]]
                prev_target_ind_for_fps = self._rs.permutation(
                    num_prev_target_ind)[:num_prev_target_ind_for_fps]
                if len(not_prev_out_ind) == 0:
                    prev_target_ind_for_fps = []
                for j in prev_target_ind_for_fps:
                    if len(matched_rows) > j:
                        # weights precomputed on-device (kernel 1, bf16) for all
                        # (row, query) pairs; just index surviving candidates
                        w = dist_h[i, matched_rows[j],
                                   np.asarray(not_prev_out_ind)].astype(np.float64)
                        if w.sum() <= 0:
                            w = w + 1e-08
                        pick = int(self._rs.choice(len(not_prev_out_ind),
                                                   p=w / w.sum()))
                    else:
                        pick = int(self._rs.permutation(len(not_prev_out_ind))[0])
                    random_false_out_ind.append(not_prev_out_ind.pop(pick))

            full_ind = [int(v) for v in prev_out_inds[i]] + random_false_out_ind
            final_out_inds.append(full_ind)
            k_list.append(len(full_ind))

            matching_full = np.concatenate(
                [matching, np.zeros(len(random_false_out_ind), bool)])
            pad = np.zeros(self.num_queries, bool)
            target['track_queries_mask'] = jnp.asarray(
                np.concatenate([np.ones_like(matching_full, bool), pad]))
            target['track_queries_fal_pos_mask'] = jnp.asarray(
                np.concatenate([~matching_full, pad]))

        # ---- ONE batched Pallas gather (one-hot MXU matmuls), no host sync ---
        K_max = max(k_list) if k_list else 0
        K_pad = _bucket_sublane(K_max)
        idx_pad = np.zeros((B_pad, K_pad, 1), np.int32)
        for i, inds in enumerate(final_out_inds):
            if inds:
                idx_pad[i, :len(inds), 0] = inds

        hs_gathered, box_gathered = _gather_rows(
            jnp.asarray(idx_pad), hs_embed, pred_boxes)
        for i, target in enumerate(targets):
            k_i = k_list[i]
            # rows beyond k_i hold query-0 data (padded idx = 0); always slice.
            target['track_query_hs_embeds'] = hs_gathered[i, :k_i]
            target['track_query_boxes'] = box_gathered[i, :k_i]

    def forward(self, samples, targets, prev_out, prev_indices):
        if targets is not None and (not self._tracking):
            if self.training:
                # TODO(synk): super().forward (full DETR backbone/transformer/
                # heads) and the HungarianMatcher are not in the given source;
                # prev_out / prev_indices are supplied synthetically.
                self.add_track_queries_to_targets(
                    targets, prev_indices, prev_out, add_false_pos=True)
            else:
                for target in targets:
                    target['track_query_hs_embeds'] = jnp.zeros(
                        (0, self.hidden_dim), jnp.float32)
                    target['track_queries_mask'] = jnp.zeros(
                        self.num_queries, bool)
                    target['track_queries_fal_pos_mask'] = jnp.zeros(
                        self.num_queries, bool)
                    target['track_query_boxes'] = jnp.zeros((0, 4), jnp.float32)
                    target['track_query_match_ids'] = jnp.zeros((0,), jnp.int32)
        # TODO(synk): final super().forward(samples, ...) (base DETR) is not in
        # the provided module source; return placeholders.
        out = {'pred_boxes': prev_out['pred_boxes'],
               'hs_embed': prev_out['hs_embed']}
        return out, targets, None, None, None


# ---------------------------------------------------------------------------
if __name__ == "__main__":
    key = jax.random.PRNGKey(0)
    B, Q, H = 2, 16, 32                     # batch, num_queries, hidden_dim
    k1, k2, k3 = jax.random.split(key, 3)

    prev_out = {
        'pred_boxes': jax.random.uniform(k1, (B, Q, 4), jnp.float32),
        'hs_embed': jax.random.normal(k2, (B, Q, H), jnp.float32),
    }
    samples = jax.random.normal(k3, (B, 3, 16, 16), jnp.float32)  # NCHW (unused here)

    targets = [
        {'track_ids': np.array([10, 11, 12, 13, 14], np.int32),
         'prev_target': {'track_ids': np.array([12, 10, 99, 13], np.int32)}},
        {'track_ids': np.array([20, 21, 22], np.int32),
         'prev_target': {'track_ids': np.array([22, 23, 20], np.int32)}},
    ]
    prev_indices = [
        (np.array([3, 7, 1, 5], np.int64), np.array([0, 1, 2, 3], np.int64)),
        (np.array([2, 9, 4], np.int64), np.array([0, 1, 2], np.int64)),
    ]

    model = DETRTrackingBasePallas(num_queries=Q, hidden_dim=H,
                                   track_query_false_positive_prob=0.2)
    out, targets, _, _, _ = model.forward(samples, targets, prev_out, prev_indices)

    pred_boxes_np = np.asarray(prev_out['pred_boxes'])
    hs_np = np.asarray(prev_out['hs_embed'])

    for i, tgt in enumerate(targets):
        hs = np.asarray(jax.block_until_ready(tgt['track_query_hs_embeds']))
        bx = np.asarray(jax.block_until_ready(tgt['track_query_boxes']))
        mid = np.asarray(jax.block_until_ready(tgt['track_query_match_ids']))
        jax.block_until_ready(tgt['track_queries_mask'])
        jax.block_until_ready(tgt['track_queries_fal_pos_mask'])
        assert hs.shape[1] == H and bx.shape[1] == 4
        assert tgt['track_queries_mask'].shape[0] == hs.shape[0] + Q

        # reference: match semantics (kernel 1)
        prev_ids = np.asarray(targets[i]['prev_target']['track_ids'])[
            np.asarray(prev_indices[i][1])]
        tids = np.asarray(targets[i]['track_ids'])
        ref_match = np.array([p in tids for p in prev_ids])
        ref_ids = np.array([int(np.nonzero(tids == p)[0][0])
                            for p in prev_ids[ref_match]], np.int64)
        np.testing.assert_array_equal(mid.astype(np.int64), ref_ids)

        # reference: gather of the original (non-FP) rows (kernel 2)
        orig_ind = np.asarray(prev_indices[i][0], np.int64)
        np.testing.assert_allclose(bx[:len(orig_ind)],
                                   pred_boxes_np[i][orig_ind],
                                   rtol=1e-6, atol=1e-6)
        np.testing.assert_allclose(hs[:len(orig_ind)],
                                   hs_np[i][orig_ind],
                                   rtol=1e-6, atol=1e-6)

    print("KERNEL_OK")
</pallas_src>

<mosaic_0001>
module attributes {stable_mosaic.version = 11 : i64} {
  func.func @_match_dist_kernel(%arg0: i32, %arg1: memref<1x8x1xi32, #tpu.memory_space<vmem>>, %arg2: memref<1x1x128xi32, #tpu.memory_space<vmem>>, %arg3: memref<1x8x1xi32, #tpu.memory_space<vmem>>, %arg4: memref<1x1x128xf32, #tpu.memory_space<vmem>>, %arg5: memref<1x8x1xi32, #tpu.memory_space<vmem>>, %arg6: memref<1x8x128xbf16, #tpu.memory_space<vmem>>) attributes {dimension_semantics = [#tpu.dimension_semantics<parallel>], iteration_bounds = array<i64: 2>, scalar_prefetch = 0 : i64, scratch_operands = 0 : i64, tpu.core_type = #tpu.core_type<tc>, window_params = [{transform_indices = @transform_0, window_bounds = array<i64: 1, 8, 1>}, {transform_indices = @transform_1, window_bounds = array<i64: 1, 1, 128>}, {transform_indices = @transform_2, window_bounds = array<i64: 1, 8, 1>}, {transform_indices = @transform_3, window_bounds = array<i64: 1, 1, 128>}, {transform_indices = @transform_4, window_bounds = array<i64: 1, 8, 1>}, {transform_indices = @transform_5, window_bounds = array<i64: 1, 8, 128>}]} {
    %c0 = arith.constant 0 : index
    %c0_0 = arith.constant 0 : index
    %c0_1 = arith.constant 0 : index
    %0 = vector.load %arg1[%c0, %c0_0, %c0_1] : memref<1x8x1xi32, #tpu.memory_space<vmem>>, vector<1x8x1xi32>
    %c0_2 = arith.constant 0 : index
    %c0_3 = arith.constant 0 : index
    %c0_4 = arith.constant 0 : index
    %1 = vector.load %arg2[%c0_2, %c0_3, %c0_4] : memref<1x1x128xi32, #tpu.memory_space<vmem>>, vector<1x1x128xi32>
    %2 = vector.broadcast %0 : vector<1x8x1xi32> to vector<1x8x128xi32>
    %3 = vector.broadcast %1 : vector<1x1x128xi32> to vector<1x8x128xi32>
    %4 = arith.cmpi eq, %2, %3 : vector<1x8x128xi32>
    %5 = tpu.iota {dimensions = array<i32: 2>} : vector<1x8x128xi32>
    %c-1_i32 = arith.constant -1 : i32
    %6 = vector.broadcast %c-1_i32 : i32 to vector<1x8x128xi32>
    %7 = arith.select %4, %5, %6 : vector<1x8x128xi1>, vector<1x8x128xi32>
    %cst = arith.constant dense<-2147483648> : vector<1x8xi32>
    %8 = vector.multi_reduction <maxsi>, %7, %cst [2] : vector<1x8x128xi32> to vector<1x8xi32>
    %9 = vector.shape_cast %8 : vector<1x8xi32> to vector<1x8x1xi32>
    %c0_5 = arith.constant 0 : index
    %c0_6 = arith.constant 0 : index
    %c0_7 = arith.constant 0 : index
    %10 = vector.load %arg5[%c0_5, %c0_6, %c0_7] : memref<1x8x1xi32, #tpu.memory_space<vmem>>, vector<1x8x1xi32>
    tpu.vector_store %arg5[%c0_5, %c0_6, %c0_7], %9 {strides = array<i32>} : memref<1x8x1xi32, #tpu.memory_space<vmem>>, vector<1x8x1xi32>,
    %c0_8 = arith.constant 0 : index
    %c0_9 = arith.constant 0 : index
    %c0_10 = arith.constant 0 : index
    %11 = vector.load %arg4[%c0_8, %c0_9, %c0_10] : memref<1x1x128xf32, #tpu.memory_space<vmem>>, vector<1x1x128xf32>
    %c0_11 = arith.constant 0 : index
    %c0_12 = arith.constant 0 : index
    %c0_13 = arith.constant 0 : index
    %12 = vector.load %arg3[%c0_11, %c0_12, %c0_13] : memref<1x8x1xi32, #tpu.memory_space<vmem>>, vector<1x8x1xi32>
    %13 = tpu.iota {dimensions = array<i32: 2>} : vector<1x8x128xi32>
    %14 = vector.broadcast %12 : vector<1x8x1xi32> to vector<1x8x128xi32>
    %15 = arith.cmpi eq, %14, %13 : vector<1x8x128xi32>
    %16 = arith.extui %15 : vector<1x8x128xi1> to vector<1x8x128xi32>
    %17 = arith.sitofp %16 : vector<1x8x128xi32> to vector<1x8x128xf32>
    "tpu.trace_start"() <{level = 10 : i32, message = "bpq,boq->bpo"}> : () -> ()
    %cst_14 = arith.constant dense<0.000000e+00> : vector<1x8x1xf32>
    %18 = tpu.matmul %17, %11, %cst_14 {dimension_numbers = #tpu.dot_dimension_numbers<[2], [2], [1], [1], [0, 0, 0, 1, 1, 1], [0], [0]>} : vector<1x8x128xf32>, vector<1x1x128xf32>, vector<1x8x1xf32> -> vector<1x8x1xf32>
    "tpu.trace_stop"() : () -> ()
    %19 = vector.broadcast %18 : vector<1x8x1xf32> to vector<1x8x128xf32>
    %20 = vector.broadcast %11 : vector<1x1x128xf32> to vector<1x8x128xf32>
    %21 = arith.subf %19, %20 : vector<1x8x128xf32>
    %22 = math.absf %21 : vector<1x8x128xf32>
    %cst_15 = arith.constant 1.41421354 : f32
    %23 = vector.broadcast %cst_15 : f32 to vector<1x8x128xf32>
    %24 = arith.mulf %22, %23 : vector<1x8x128xf32>
    %25 = arith.truncf %24 : vector<1x8x128xf32> to vector<1x8x128xbf16>
    %c0_16 = arith.constant 0 : index
    %c0_17 = arith.constant 0 : index
    %c0_18 = arith.constant 0 : index
    %26 = vector.load %arg6[%c0_16, %c0_17, %c0_18] : memref<1x8x128xbf16, #tpu.memory_space<vmem>>, vector<1x8x128xbf16>
    tpu.vector_store %arg6[%c0_16, %c0_17, %c0_18], %25 {strides = array<i32>} : memref<1x8x128xbf16, #tpu.memory_space<vmem>>, vector<1x8x128xbf16>,
    return
  }
  func.func @transform_0(%arg0: i32) -> (i32, i32, i32) {
    %c0_i32 = arith.constant 0 : i32
    %c0_i32_0 = arith.constant 0 : i32
    %c0_i32_1 = arith.constant 0 : i32
    return %arg0, %c0_i32, %c0_i32_0 : i32, i32, i32
  }
  func.func @transform_1(%arg0: i32) -> (i32, i32, i32) {
    %c0_i32 = arith.constant 0 : i32
    %c0_i32_0 = arith.constant 0 : i32
    %c0_i32_1 = arith.constant 0 : i32
    return %arg0, %c0_i32, %c0_i32_0 : i32, i32, i32
  }
  func.func @transform_2(%arg0: i32) -> (i32, i32, i32) {
    %c0_i32 = arith.constant 0 : i32
    %c0_i32_0 = arith.constant 0 : i32
    %c0_i32_1 = arith.constant 0 : i32
    return %arg0, %c0_i32, %c0_i32_0 : i32, i32, i32
  }
  func.func @transform_3(%arg0: i32) -> (i32, i32, i32) {
    %c0_i32 = arith.constant 0 : i32
    %c0_i32_0 = arith.constant 0 : i32
    %c0_i32_1 = arith.constant 0 : i32
    return %arg0, %c0_i32, %c0_i32_0 : i32, i32, i32
  }
  func.func @transform_4(%arg0: i32) -> (i32, i32, i32) {
    %c0_i32 = arith.constant 0 : i32
    %c0_i32_0 = arith.constant 0 : i32
    %c0_i32_1 = arith.constant 0 : i32
    return %arg0, %c0_i32, %c0_i32_0 : i32, i32, i32
  }
  func.func @transform_5(%arg0: i32) -> (i32, i32, i32) {
    %c0_i32 = arith.constant 0 : i32
    %c0_i32_0 = arith.constant 0 : i32
    %c0_i32_1 = arith.constant 0 : i32
    return %arg0, %c0_i32, %c0_i32_0 : i32, i32, i32
  }
}

</mosaic_0001>

<bundles_post_ra>
// kernel: _match_and_dist.1
= control target key start
LH: loop header
LB: loop body
LE: loop exit
PB: predicated region body
PF: predicated region fallthrough
CT: control target
= control target key end

     0   :  { %11 = vsyncpa [#allocation3], 0  ;;  %s727_s0 = inlined_call_operand.vmem [shape: s32[2,8,1], index: 0, kind: input, shape index: {}]   ;;  %s728_s1 = inlined_call_operand.vmem [shape: s32[2,1,128], index: 1, kind: input, shape index: {}]   ;;  %s729_s2 = inlined_call_operand.vmem [shape: s32[2,8,1], index: 2, kind: input, shape index: {}]   ;;  %s730_s3 = inlined_call_operand.vmem [shape: f32[2,1,128], index: 3, kind: input, shape index: {}]   ;;  %s731_s4 = inlined_call_operand.vmem [shape: s32[2,8,1], index: 4, kind: output, shape index: {0}]   ;;  %s732_s5 = inlined_call_operand.hbm [shape: bf16[2,8,128], index: 5, kind: output, shape index: {1}]  }
   0x1   :  { %13 = vsyncpa [#allocation3 + $0x1], 0  ;;  %s616_s18 = smov 0   ;;  %s618_s19 = smov 0  }
   0x2   :  { %s620_s20 = smov 0   ;;  %s622_s21 = smov 0  }
   0x3 LB: > { %s637_s22 = sadd.s32 4294967295, %s581_s21   ;;  %s461_s23 = sadd.s32 4294967294, %s581_s21   ;;  %s581_s21 = sphi %s622_s21, %s738_s21   ;;  %s577_s20 = sphi %s620_s20, %s737_s20   ;;  %s573_s19 = sphi %s618_s19, %s736_s19   ;;  %s569_s18 = sphi %s616_s18, %s735_s18  }
   0x4   : > { %s641_s24 = sadd.s32 1, %s581_s21   ;;  %s156_s25 = sadd.s32 1, %s577_s20 }
   0x5   : > { %s153_s26 = ssub.s32 %s581_s21, %s641_s24  ;;  %p166_p0 = scmp.ne.s32.totalorder %s577_s20, %s573_s19 }
   0x6   : > { %p154_p1 = scmp.eq.s32.totalorder %s153_s26, 0  ;;  %p167_p2 = scmp.eq.s32.totalorder %s637_s22, 1 }
   0x7   : > { %p172_p3 = scmp.ne.s32.totalorder %s573_s19, %s569_s18  ;;  %p173_p4 = scmp.eq.s32.totalorder %s461_s23, 1 }
   0x8   : > { %s652_s27 = scalar_select %p154_p1, %s577_s20, %s156_s25  }
   0x9   : > { %p654_p5 = por %p167_p2, %p166_p0  ;;  %p658_p6 = por %p173_p4, %p172_p3 }
   0xa   : > { %p464_p7 = scmp.ge.s32.totalorder %s581_s21, 1  ;;  %p217_p8 = scmp.lt.s32.totalorder %s581_s21, 3 }
   0xc   : > { %p218_p9 = pnand %p464_p7, %p217_p8 }
   0xd   : > { %p258_p10 = scmp.lt.s32.totalorder (!%p218_p9), %s637_s22, 1  ;;  %v583_v0 = vmov (!%p218_p9), 0   ;;  %v286_v3 = vlaneseq (!%p218_p9)  ;;  %v584_v12 = vmov (!%p218_p9), 0.0   ;;  %s255_s25 = sand.u32 (!%p218_p9), 1, %s573_s19  }
   0xe   : > { %221 = sbr.rel (%p218_p9) target bundleno = 451 (0x1c3), region = 36  ;;  %517 = vset.pattern.permute.xlu0 (!%p218_p9), %v583_v0  ;;  %518 = vset.pattern.permute.xlu1 (!%p218_p9), %v583_v0  ;;  %s465_s26 = sshll.u32 (!%p218_p9), %s255_s25, 2 }
   0xf   : > { %v287_v5 = vand.u32 (!%p218_p9), 127, %v286_v3  ;;  %s473_s7 = sshll.u32 (!%p218_p9), %s637_s22, 6  ;;  %s585_s14 = smov (!%p218_p9), [#allocation2]  }
  0x10   : > { %s687_s11 = scalar_lea.hbm (!%p218_p9), %s732_s5, %s473_s7 }
  0x15   : > { %s259_s30 = scalar_select %p258_p10, %s637_s22, 1 }
  0x17   : > { %s666_s6 = sshll.u32 %s259_s30, 3  ;;  %s264_s15 = scalar_lea.vmem %s728_s1, %s259_s30 }
  0x18   : > { %s261_s9 = scalar_lea.vmem %s727_s0, %s666_s6  ;;  %s268_s12 = scalar_lea.vmem %s729_s2, %s666_s6  ;;  %v469_v4 = vld [vmem:[%s264_s15] ss:$0 sm:$0xff] }
  0x19   : > { %v276_v1 = vld [vmem:[%s261_s9] sm:$0xff]  ;;  %s271_s23 = scalar_lea.vmem %s730_s3, %s259_s30  ;;  %s257_s30 = scalar_lea.vmem [#allocation2], %s465_s26 }
  0x1a   : > { %279 = vperm.xlu0 %517, %v276_v1   ;;  %v306_v2 = vld [vmem:[%s268_s12] sm:$0xff]  ;;  %s348_s8 = sshll.u32 %s257_s30, 4  ;;  %s332_s12 = scalar_lea.sflag [#allocation3], %s255_s25  ;;  %s349_s8 = int_to_ptr.vmem [resolvable:$true] %s348_s8 }
  0x1b   : > { %308 = vperm.xlu1 %518, %v306_v2   ;;  %v471_v11 = vld [vmem:[%s271_s23] ss:$0 sm:$0xff]  ;;  %s519_s13 = scalar_lea.vmem %s349_s8, 64  ;;  %s523_s15 = sshll.u32 %s585_s14, 4  ;;  %s524_s15 = int_to_ptr.vmem [resolvable:$false] %s523_s15 }
  0x1c   : > { %p520_p11 = scmp.ne.s32.totalorder %s349_s8, %s519_s13  ;;  %s525_s16 = scalar_lea.vmem %s524_s15, 128 }
  0x1d   : > { %p526_p0 = scmp.lt.s32.totalorder %s349_s8, %s524_s15  ;;  %p527_p1 = scmp.lt.s32.totalorder %s525_s16, %s519_s13 }
  0x1e   : > { %p521_p12 = pnand %p520_p11, %p654_p5 }
  0x1f   : > { %p528_p2 = por %p527_p1, %p526_p0 }
  0x20   : > { %p522_p13 = pneg %p521_p12 }
  0x22   : > { %p529_p3 = pnand %p528_p2, %p522_p13 }
  0x99   : > { %v280_v6 = vpop.permute.xlu0 %279 }
  0x9a   : > { %vm285_vm0 = vcmp.eq.s32.totalorder %v280_v6, %v469_v4  ;;  %v309_v10 = vpop.permute.xlu1 %308 }
  0x9b   : > { %v288_v7 = vsel %vm285_vm0, %v287_v5, 4294967295  ;;  %vm310_vm1 = vcmp.eq.s32.totalorder %v309_v10, %v287_v5 }
  0x9c   : > { %v290_v8 = vshra.s32 %v288_v7, 16  ;;  %v470_v13 = vsel %vm310_vm1, 1.0, %v584_v12  ;;  %v289_v15 = vand.u32 65535, %v288_v7 }
  0x9d   : > { %v319_v14 = vmul.f32 %v471_v11, %v470_v13 }
  0x9e   : > { %v292_v9 = vcvt.s32.f32 %v290_v8  ;;  %v291_v17 = vcvt.s32.f32 %v289_v15 }
  0x9f   : > { %320 = vadd.xlane.f32.xlu1 %v319_v14 }
  0xa0   : > { %293 = vmax.xlane.f32.xlu0 %v292_v9 }
 0x12c   : > { %v321_v19 = vpop.xlane.xlu1 %320 }
 0x12d   : > { %v294_v16 = vpop.xlane.xlu0 %293  ;;  %v322_v20 = vsub.f32 %v321_v19, %v471_v11 }
 0x12e   : > { %vm295_vm2 = vcmp.eq.f32.partialorder %v292_v9, %v294_v16 }
 0x12f   : > { %v296_v18 = vsel %vm295_vm2, %v291_v17, -inf  ;;  %v323_v21 = vand.u32 2147483647, %v322_v20 }
 0x130   : > { %297 = vmax.xlane.f32.xlu0 %v296_v18 }
 0x131   : > { %v324_v22 = vmul.f32 1.4142135, %v323_v21 }
 0x133   : > { %v325_v23 = vpack.c.bf16 %v324_v22, %v324_v22 }
 0x135   : > { %326 = vst [vmem:[%s257_s30] sm:$0xf] %v325_v23 }
 0x136   : > { %532 = shalt.err (!%p529_p3)
}
 0x137   : > { %s533_s22 = scalar_lea.hbm %s687_s11, 64  ;;  %s537_s25 = scalar_lea.hbm %s732_s5, 128 }
 0x138   : > { %p534_p4 = scmp.ne.s32.totalorder %s687_s11, %s533_s22  ;;  %p538_p9 = scmp.lt.u32.totalorder %s687_s11, %s732_s5 }
 0x139   : > { %p539_p10 = scmp.lt.u32.totalorder %s537_s25, %s533_s22  ;;  %p541_p12 = scmp.lt.u32.totalorder %s533_s22, %s687_s11 }
 0x13a   : > { %p535_p7 = pnand %p534_p4, %p654_p5 }
 0x13b   : > { %p540_p11 = por %p539_p10, %p538_p9 }
 0x13c   : > { %p536_p8 = pneg %p535_p7 }
 0x13d   : > { %p542_p13 = por %p541_p12, %p540_p11 }
 0x13f   : > { %p543_p0 = pnand %p542_p13, %p536_p8 }
 0x141   : > { %546 = shalt.err (!%p543_p0)
}
 0x142   : > { %476 = dma.vmem_to_hbm [thread:$0]  (%p654_p5), %s349_s8, 64, %s687_s11, %s332_s12   ;;  %v300_v24 = vcvt.f32.s32 %v294_v16  ;;  %vm303_vm3 = vcmask 7168  }
 0x143   : > { %s275_s10 = scalar_lea.vmem %s731_s4, %s666_s6 }
 0x144   : > { %v301_v26 = vshll.u32 %v300_v24, 16 }
 0x1bd   : > { %v298_v25 = vpop.xlane.xlu0 %297 }
 0x1be   : > { %v299_v27 = vcvt.f32.s32 %v298_v25 }
 0x1c0   : > { %v302_v28 = vadd.s32 %v301_v26, %v299_v27 }
 0x1c2   : > { %304 = vst.msk [vmem:[%s275_s10] sm:$0xff] %vm303_vm3, %v302_v28 }
 0x1c3 PF: > { %p482_p1 = scmp.ge.s32.totalorder %s581_s21, 2  ;;  %s367_s28 = sand.u32 1, %s569_s18  }
 0x1c4   : > { %s368_s8 = scalar_lea.sflag [#allocation3], %s367_s28 }
 0x1c5   : > { %p479_p2 = pnand %p482_p1, %p658_p6 }
 0x1c7   : > { %564 = dma.done.wait (!%p479_p2), %s368_s8, 64  }
 0x1c8   : > { %566 = vsyncadd (!%p479_p2), %s368_s8, 4294967232  ;;  %p16_p5 = scmp.ge.s32.totalorder %s641_s24, 4   ;;  %s735_s18 = smov %s573_s19 }
 0x1c9   : > { %s736_s19 = smov %s577_s20  ;;  %s737_s20 = smov %s652_s27 }
 0x1ca   : > { %s738_s21 = smov %s641_s24  ;;  %18 = sbr.rel (!%p16_p5) target bundleno = 3 (0x3), region = 92 }
 0x1d1   :  { %373 = vsyncpa [#allocation3], 1 }
 0x1d2   :  { %375 = vsyncpa [#allocation3 + $0x1], 1 }

</bundles_post_ra>
